<compile_context>
chip_gen: v6e
topology: v6e:2x2x1
jax: 0.10.0
libtpu: 0.0.40
codegen_flags: <defaults>
</compile_context>

<pallas_src>
import functools
import math

import jax
import jax.numpy as jnp
from jax.experimental import pallas as pl
from jax.experimental.pallas import tpu as pltpu

LANE = 128
SUBLANE = 8
NEG_INF = -1e30


def _round_up(x, m):
    return ((x + m - 1) // m) * m


# -----------------------------------------------------------------------------
# Fused kernel: one grid step = one RNN timestep.
#   affine1 (pre-folded) + LSTMCell + all action heads (+log_softmax) + value.
# Weights / biases have constant index_maps -> fetched once, VMEM-resident.
# h/c outputs have constant index_maps -> grid-resident running state.
# -----------------------------------------------------------------------------

def fused_rnn_kernel(x_ref, h0_ref, c0_ref, wgx_ref, wgh_ref, bg_ref,
                     wo_ref, bo_ref, h_ref, c_ref, out_ref,
                     *, head_slabs, value_off):
    """
    x_ref  : (1, BAp, N)     this timestep's inputs
    h0_ref : (BAp, Hp)       initial hidden (zero-padded lanes/rows)
    c0_ref : (BAp, Hp)       initial cell   (zero-padded lanes/rows)
    wgx_ref: (N,  4*Hp) bf16 folded W1^T @ W_ih^T, per-gate 128-lane slabs
    wgh_ref: (Hp, 4*Hp) bf16 W_hh^T, per-gate 128-lane slabs
    bg_ref : (1, 4*Hp)  f32  b1 @ W_ih^T + b_ih + b_hh (0 in padded lanes)
    wo_ref : (Hp, OutW) bf16 all head weights + value weight, lane-dense slabs
    bo_ref : (1, OutW)  f32  head biases (-1e30 in padded lanes) + value bias
    h_ref  : (BAp, Hp)       running / final hidden (grid-resident output)
    c_ref  : (BAp, Hp)       running / final cell   (grid-resident output)
    out_ref: (1, BAp, OutW)  per-step log_softmax head slabs + value slab
    """
    t = pl.program_id(0)
    Hp = h_ref.shape[-1]

    @pl.when(t == 0)
    def _():
        h_ref[...] = h0_ref[...]
        c_ref[...] = c0_ref[...]

    x = x_ref[0].astype(jnp.bfloat16)                       # (BAp, N)
    h_prev = h_ref[...]                                     # (BAp, Hp) f32

    # Two MXU matmuls for all four gates (affine1 folded into wgx); f32 accum.
    gates = (jnp.dot(x, wgx_ref[...], preferred_element_type=jnp.float32)
             + jnp.dot(h_prev.astype(jnp.bfloat16), wgh_ref[...],
                       preferred_element_type=jnp.float32)
             + bg_ref[...])

    # Each gate occupies its own 128-lane-aligned slab of width Hp.
    i_g = jax.nn.sigmoid(gates[:, 0 * Hp:1 * Hp])
    f_g = jax.nn.sigmoid(gates[:, 1 * Hp:2 * Hp])
    g_g = jnp.tanh(gates[:, 2 * Hp:3 * Hp])
    o_g = jax.nn.sigmoid(gates[:, 3 * Hp:4 * Hp])

    # Padding lanes of c stay exactly 0 (zero gate bias/weights there), so the
    # padded-state representation is a stable invariant across timesteps.
    c_new = f_g * c_ref[...] + i_g * g_g
    h_new = o_g * jnp.tanh(c_new)

    h_ref[...] = h_new
    c_ref[...] = c_new

    # One wide MXU matmul for all action heads + the value head.
    logits = (jnp.dot(h_new.astype(jnp.bfloat16), wo_ref[...],
                      preferred_element_type=jnp.float32) + bo_ref[...])

    # Per-head log_softmax over its 128-lane-aligned slab. Padded lanes carry a
    # -1e30 bias, so exp() underflows to 0 and they never affect the result.
    for off, width in head_slabs:
        sl = logits[:, off:off + width]
        m = jnp.max(sl, axis=-1, keepdims=True)
        z = sl - m
        lse = jnp.log(jnp.sum(jnp.exp(z), axis=-1, keepdims=True))
        out_ref[0, :, off:off + width] = z - lse

    # Value slab: plain linear projection (no softmax), lane-dense store.
    out_ref[0, :, value_off:] = logits[:, value_off:]


# -----------------------------------------------------------------------------
# One-time weight preparation (fold / transpose / pad / bf16 cast).
# -----------------------------------------------------------------------------

def prepare_params(params):
    H, N = params["w1"].shape
    Hp = _round_up(H, LANE)
    G = 4 * Hp
    f32 = jnp.float32

    # Fold affine1 into the input->gate weight (enc is never returned):
    #   gates = x @ (W1^T W_ih^T) + h @ W_hh^T + (b1 W_ih^T + b_ih + b_hh)
    # Fold computed in f32, cast to bf16 only at the end.
    wx = params["w1"].T.astype(f32) @ params["w_ih"].T.astype(f32)   # (N, 4H)
    wh = params["w_hh"].T.astype(f32)                                 # (H, 4H)
    bg = params["b1"] @ params["w_ih"].T + params["b_ih"] + params["b_hh"]

    wg_x = jnp.zeros((N, G), f32)
    wg_h = jnp.zeros((Hp, G), f32)
    bgp = jnp.zeros((1, G), f32)
    for g in range(4):
        wg_x = wg_x.at[:, g * Hp:g * Hp + H].set(wx[:, g * H:(g + 1) * H])
        wg_h = wg_h.at[:H, g * Hp:g * Hp + H].set(wh[:, g * H:(g + 1) * H])
        bgp = bgp.at[0, g * Hp:g * Hp + H].set(bg[g * H:(g + 1) * H])

    # Concatenate all head weights + the value weight into one lane-dense slab.
    head_dims = tuple(int(w.shape[0]) for (w, _) in params["heads"])
    head_slabs, off = [], 0
    for o in head_dims:
        width = _round_up(o, LANE)
        head_slabs.append((off, width))
        off += width
    value_off = off
    out_w = value_off + LANE

    wo = jnp.zeros((Hp, out_w), f32)
    bo = jnp.full((1, out_w), NEG_INF, f32)
    for (slab_off, _), (w, b) in zip(head_slabs, params["heads"]):
        o = w.shape[0]
        wo = wo.at[:H, slab_off:slab_off + o].set(w.T)
        bo = bo.at[0, slab_off:slab_off + o].set(b)
    wo = wo.at[:H, value_off:value_off + 1].set(params["wv"].T)
    bo = bo.at[0, value_off:].set(0.0)
    bo = bo.at[0, value_off:value_off + 1].set(params["bv"])

    return {
        "H": H, "Hp": Hp, "N": N, "G": G,
        "head_dims": head_dims,
        "head_slabs": tuple(head_slabs),
        "value_off": value_off,
        "out_w": out_w,
        "wg_x": wg_x.astype(jnp.bfloat16),
        "wg_h": wg_h.astype(jnp.bfloat16),
        "bg": bgp,
        "wo": wo.astype(jnp.bfloat16),
        "bo": bo,
    }


# -----------------------------------------------------------------------------
# Sequence wrapper: one pallas_call runs T timesteps with resident weights.
# -----------------------------------------------------------------------------

def rnn_forward_seq(x_seq, prev_hid, prep):
    """x_seq: (T, B, nagents, N); prev_hid: (h, c) each (B*nagents, H).

    Returns: (list of per-head log-probs, each (T, B, A, o)), v (T, B, A, 1),
             final (h, c) each (B*nagents, H).
    """
    T, B, A, N = x_seq.shape
    H, Hp, G = prep["H"], prep["Hp"], prep["G"]
    out_w, value_off = prep["out_w"], prep["value_off"]
    BA = B * A
    BAp = _round_up(BA, SUBLANE)          # unmasked (8,128)-friendly stores

    h0, c0 = prev_hid
    x2 = x_seq.reshape(T, BA, N).astype(jnp.float32)
    if BAp != BA:
        x2 = jnp.pad(x2, ((0, 0), (0, BAp - BA), (0, 0)))
    h0p = jnp.pad(h0.astype(jnp.float32), ((0, BAp - BA), (0, Hp - H)))
    c0p = jnp.pad(c0.astype(jnp.float32), ((0, BAp - BA), (0, Hp - H)))

    # Explicit VMEM budget (bf16 weights + double-buffered per-step blocks +
    # resident h/c).  Relevant on v7x (64 MiB physical / 32 MiB scoped default).
    est = (prep["wg_x"].nbytes + prep["wg_h"].nbytes + prep["wo"].nbytes
           + prep["bg"].nbytes + prep["bo"].nbytes
           + 2 * BAp * N * 4 + 2 * BAp * out_w * 4
           + 4 * BAp * Hp * 4 + BAp * G * 4)
    vmem_limit = int(min(max(2 * est, 16 * 2**20), 48 * 2**20))

    kernel = functools.partial(fused_rnn_kernel,
                               head_slabs=prep["head_slabs"],
                               value_off=value_off)

    h_fin, c_fin, packed = pl.pallas_call(
        kernel,
        out_shape=(jax.ShapeDtypeStruct((BAp, Hp), jnp.float32),
                   jax.ShapeDtypeStruct((BAp, Hp), jnp.float32),
                   jax.ShapeDtypeStruct((T, BAp, out_w), jnp.float32)),
        grid=(T,),
        in_specs=[
            pl.BlockSpec((1, BAp, N), lambda t: (t, 0, 0)),    # x (per step)
            pl.BlockSpec((BAp, Hp), lambda t: (0, 0)),         # h0 (resident)
            pl.BlockSpec((BAp, Hp), lambda t: (0, 0)),         # c0 (resident)
            pl.BlockSpec((N, G), lambda t: (0, 0)),            # wg_x (resident)
            pl.BlockSpec((Hp, G), lambda t: (0, 0)),           # wg_h (resident)
            pl.BlockSpec((1, G), lambda t: (0, 0)),            # bg   (resident)
            pl.BlockSpec((Hp, out_w), lambda t: (0, 0)),       # wo   (resident)
            pl.BlockSpec((1, out_w), lambda t: (0, 0)),        # bo   (resident)
        ],
        out_specs=(
            pl.BlockSpec((BAp, Hp), lambda t: (0, 0)),         # h (resident)
            pl.BlockSpec((BAp, Hp), lambda t: (0, 0)),         # c (resident)
            pl.BlockSpec((1, BAp, out_w), lambda t: (t, 0, 0)),  # per-step out
        ),
        compiler_params=pltpu.CompilerParams(
            dimension_semantics=("arbitrary",),
            vmem_limit_bytes=vmem_limit),
    )(x2, h0p, c0p, prep["wg_x"], prep["wg_h"], prep["bg"],
      prep["wo"], prep["bo"])

    heads = []
    for (off, _), o in zip(prep["head_slabs"], prep["head_dims"]):
        heads.append(packed[:, :BA, off:off + o].reshape(T, B, A, o))
    v = packed[:, :BA, value_off:value_off + 1].reshape(T, B, A, 1)
    ret = (h_fin[:BA, :H], c_fin[:BA, :H])
    return heads, v, ret


# -----------------------------------------------------------------------------
# Single-step forward (exact module semantics) = T=1 case of the same kernel.
# -----------------------------------------------------------------------------

def rnn_forward(x, prev_hid, prep):
    """x: (B, nagents, num_inputs); prev_hid: (h, c) each (B*nagents, H)."""
    heads, v, ret = rnn_forward_seq(x[None], prev_hid, prep)
    return [h[0] for h in heads], v[0], ret


# -----------------------------------------------------------------------------
# Deterministic parameter init (PyTorch-style uniform(-1/sqrt(fan_in), ...))
# -----------------------------------------------------------------------------

def init_params(key, num_inputs, hid_size, naction_heads):
    keys = jax.random.split(key, 8 + 2 * len(naction_heads))
    k = iter(keys)

    def unif(rng, shape, fan_in):
        bound = 1.0 / math.sqrt(fan_in)
        return jax.random.uniform(rng, shape, jnp.float32, -bound, bound)

    params = {
        "w1": unif(next(k), (hid_size, num_inputs), num_inputs),
        "b1": unif(next(k), (hid_size,), num_inputs),
        "w_ih": unif(next(k), (4 * hid_size, hid_size), hid_size),
        "b_ih": unif(next(k), (4 * hid_size,), hid_size),
        "w_hh": unif(next(k), (4 * hid_size, hid_size), hid_size),
        "b_hh": unif(next(k), (4 * hid_size,), hid_size),
        "wv": unif(next(k), (1, hid_size), hid_size),
        "bv": unif(next(k), (1,), hid_size),
        "heads": [],
    }
    for o in naction_heads:
        params["heads"].append((unif(next(k), (o, hid_size), hid_size),
                                unif(next(k), (o,), hid_size)))
    return params


# -----------------------------------------------------------------------------
# Pure-JAX f32 reference (un-fused, un-folded math, for correctness checking)
# -----------------------------------------------------------------------------

def rnn_forward_ref(x, prev_hid, params):
    B, A, N = x.shape
    H = params["w1"].shape[0]
    BA = B * A
    x2 = x.reshape(BA, N)
    h0, c0 = prev_hid
    enc = x2 @ params["w1"].T + params["b1"]
    gates = (enc @ params["w_ih"].T + params["b_ih"]
             + h0 @ params["w_hh"].T + params["b_hh"])
    i_g = jax.nn.sigmoid(gates[:, 0 * H:1 * H])
    f_g = jax.nn.sigmoid(gates[:, 1 * H:2 * H])
    g_g = jnp.tanh(gates[:, 2 * H:3 * H])
    o_g = jax.nn.sigmoid(gates[:, 3 * H:4 * H])
    c_new = f_g * c0 + i_g * g_g
    h_new = o_g * jnp.tanh(c_new)
    nh3 = h_new.reshape(B, A, H)
    v = nh3 @ params["wv"].T + params["bv"]
    heads = [jax.nn.log_softmax(nh3 @ w.T + b, axis=-1)
             for (w, b) in params["heads"]]
    return heads, v, (h_new, c_new)


def rnn_forward_seq_ref(x_seq, prev_hid, params):
    h, c = prev_hid
    heads_all, v_all = [], []
    for t in range(x_seq.shape[0]):
        heads, v, (h, c) = rnn_forward_ref(x_seq[t], (h, c), params)
        heads_all.append(heads)
        v_all.append(v)
    heads_stacked = [jnp.stack([hs[i] for hs in heads_all])
                     for i in range(len(heads_all[0]))]
    return heads_stacked, jnp.stack(v_all), (h, c)


if __name__ == "__main__":
    batch = 2
    nagents = 2
    num_inputs = 16
    hid_size = 32
    naction_heads = (5, 7)
    T = 6

    key = jax.random.PRNGKey(0)
    kx, ks, kp = jax.random.split(key, 3)

    params = init_params(kp, num_inputs, hid_size, naction_heads)
    prep = prepare_params(params)

    x = jax.random.normal(kx, (batch, nagents, num_inputs), jnp.float32)
    x_seq = jax.random.normal(ks, (T, batch, nagents, num_inputs), jnp.float32)
    # init_hidden(batch_size): zeros of shape (batch*nagents, hid_size)
    h0 = jnp.zeros((batch * nagents, hid_size), jnp.float32)
    c0 = jnp.zeros((batch * nagents, hid_size), jnp.float32)

    # bf16 weights -> tolerances loosened vs. the all-f32 reference.
    ATOL = RTOL = 2e-2

    # --- single-step forward (exact module semantics) ---
    fwd = jax.jit(lambda xx, hh, cc: rnn_forward(xx, (hh, cc), prep))
    heads_out, v, ret = fwd(x, h0, c0)
    jax.block_until_ready((heads_out, v, ret))

    heads_ref, v_ref, ret_ref = rnn_forward_ref(x, (h0, c0), params)
    for a, b in zip(heads_out, heads_ref):
        assert jnp.allclose(a, b, atol=ATOL, rtol=RTOL), "head mismatch"
    assert jnp.allclose(v, v_ref, atol=ATOL, rtol=RTOL), "value mismatch"
    assert jnp.allclose(ret[0], ret_ref[0], atol=ATOL, rtol=RTOL), "hidden mismatch"
    assert jnp.allclose(ret[1], ret_ref[1], atol=ATOL, rtol=RTOL), "cell mismatch"

    # --- in-kernel time loop (T steps, weight-resident, one pallas_call) ---
    seq_fwd = jax.jit(lambda xs, hh, cc: rnn_forward_seq(xs, (hh, cc), prep))
    heads_s, v_s, ret_s = seq_fwd(x_seq, h0, c0)
    jax.block_until_ready((heads_s, v_s, ret_s))

    heads_sr, v_sr, ret_sr = rnn_forward_seq_ref(x_seq, (h0, c0), params)
    for a, b in zip(heads_s, heads_sr):
        assert jnp.allclose(a, b, atol=ATOL, rtol=RTOL), "seq head mismatch"
    assert jnp.allclose(v_s, v_sr, atol=ATOL, rtol=RTOL), "seq value mismatch"
    assert jnp.allclose(ret_s[0], ret_sr[0], atol=ATOL, rtol=RTOL), "seq hidden mismatch"
    assert jnp.allclose(ret_s[1], ret_sr[1], atol=ATOL, rtol=RTOL), "seq cell mismatch"

    print("KERNEL_OK")
</pallas_src>

<mosaic_0001>
module attributes {stable_mosaic.version = 11 : i64} {
  func.func @fused_rnn_kernel(%arg0: i32, %arg1: memref<1x8x16xf32, #tpu.memory_space<vmem>>, %arg2: memref<8x128xf32, #tpu.memory_space<vmem>>, %arg3: memref<8x128xf32, #tpu.memory_space<vmem>>, %arg4: memref<16x512xbf16, #tpu.memory_space<vmem>>, %arg5: memref<128x512xbf16, #tpu.memory_space<vmem>>, %arg6: memref<1x512xf32, #tpu.memory_space<vmem>>, %arg7: memref<128x384xbf16, #tpu.memory_space<vmem>>, %arg8: memref<1x384xf32, #tpu.memory_space<vmem>>, %arg9: memref<8x128xf32, #tpu.memory_space<vmem>>, %arg10: memref<8x128xf32, #tpu.memory_space<vmem>>, %arg11: memref<1x8x384xf32, #tpu.memory_space<vmem>>) attributes {dimension_semantics = [#tpu.dimension_semantics<arbitrary>], iteration_bounds = array<i64: 1>, scalar_prefetch = 0 : i64, scratch_operands = 0 : i64, tpu.core_type = #tpu.core_type<tc>, window_params = [{transform_indices = @transform_0, window_bounds = array<i64: 1, 8, 16>}, {pipeline_mode = #tpu.pipeline_mode<synchronous>, transform_indices = @transform_1, window_bounds = array<i64: 8, 128>}, {pipeline_mode = #tpu.pipeline_mode<synchronous>, transform_indices = @transform_2, window_bounds = array<i64: 8, 128>}, {pipeline_mode = #tpu.pipeline_mode<synchronous>, transform_indices = @transform_3, window_bounds = array<i64: 16, 512>}, {pipeline_mode = #tpu.pipeline_mode<synchronous>, transform_indices = @transform_4, window_bounds = array<i64: 128, 512>}, {pipeline_mode = #tpu.pipeline_mode<synchronous>, transform_indices = @transform_5, window_bounds = array<i64: 1, 512>}, {pipeline_mode = #tpu.pipeline_mode<synchronous>, transform_indices = @transform_6, window_bounds = array<i64: 128, 384>}, {pipeline_mode = #tpu.pipeline_mode<synchronous>, transform_indices = @transform_7, window_bounds = array<i64: 1, 384>}, {pipeline_mode = #tpu.pipeline_mode<synchronous>, transform_indices = @transform_8, window_bounds = array<i64: 8, 128>}, {pipeline_mode = #tpu.pipeline_mode<synchronous>, transform_indices = @transform_9, window_bounds = array<i64: 8, 128>}, {transform_indices = @transform_10, window_bounds = array<i64: 1, 8, 384>}]} {
    %c0_i32 = arith.constant 0 : i32
    %0 = arith.cmpi eq, %arg0, %c0_i32 : i32
    %1 = arith.extui %0 : i1 to i32
    %c0_i32_0 = arith.constant 0 : i32
    %2 = arith.cmpi ne, %1, %c0_i32_0 : i32
    scf.if %2 {
      %c0_37 = arith.constant 0 : index
      %c0_38 = arith.constant 0 : index
      %82 = vector.load %arg2[%c0_37, %c0_38] : memref<8x128xf32, #tpu.memory_space<vmem>>, vector<8x128xf32>
      %c0_39 = arith.constant 0 : index
      %c0_40 = arith.constant 0 : index
      %83 = vector.load %arg9[%c0_39, %c0_40] : memref<8x128xf32, #tpu.memory_space<vmem>>, vector<8x128xf32>
      tpu.vector_store %arg9[%c0_39, %c0_40], %82 {strides = array<i32>} : memref<8x128xf32, #tpu.memory_space<vmem>>, vector<8x128xf32>,
      %c0_41 = arith.constant 0 : index
      %c0_42 = arith.constant 0 : index
      %84 = vector.load %arg3[%c0_41, %c0_42] : memref<8x128xf32, #tpu.memory_space<vmem>>, vector<8x128xf32>
      %c0_43 = arith.constant 0 : index
      %c0_44 = arith.constant 0 : index
      %85 = vector.load %arg10[%c0_43, %c0_44] : memref<8x128xf32, #tpu.memory_space<vmem>>, vector<8x128xf32>
      tpu.vector_store %arg10[%c0_43, %c0_44], %84 {strides = array<i32>} : memref<8x128xf32, #tpu.memory_space<vmem>>, vector<8x128xf32>,
    } else {
    }
    %c0 = arith.constant 0 : index
    %c0_1 = arith.constant 0 : index
    %c0_2 = arith.constant 0 : index
    %3 = vector.load %arg1[%c0, %c0_1, %c0_2] : memref<1x8x16xf32, #tpu.memory_space<vmem>>, vector<1x8x16xf32>
    %4 = vector.shape_cast %3 : vector<1x8x16xf32> to vector<8x16xf32>
    %5 = arith.truncf %4 : vector<8x16xf32> to vector<8x16xbf16>
    %c0_3 = arith.constant 0 : index
    %c0_4 = arith.constant 0 : index
    %6 = vector.load %arg9[%c0_3, %c0_4] : memref<8x128xf32, #tpu.memory_space<vmem>>, vector<8x128xf32>
    %c0_5 = arith.constant 0 : index
    %c0_6 = arith.constant 0 : index
    %7 = vector.load %arg4[%c0_5, %c0_6] : memref<16x512xbf16, #tpu.memory_space<vmem>>, vector<16x512xbf16>
    %cst = arith.constant dense<0.000000e+00> : vector<8x512xf32>
    %8 = tpu.matmul %5, %7, %cst {dimension_numbers = #tpu.dot_dimension_numbers<[1], [0], [0], [1], [0, 0, 1, 1], [], []>} : vector<8x16xbf16>, vector<16x512xbf16>, vector<8x512xf32> -> vector<8x512xf32>
    %9 = arith.truncf %6 : vector<8x128xf32> to vector<8x128xbf16>
    %c0_7 = arith.constant 0 : index
    %c0_8 = arith.constant 0 : index
    %10 = vector.load %arg5[%c0_7, %c0_8] : memref<128x512xbf16, #tpu.memory_space<vmem>>, vector<128x512xbf16>
    %cst_9 = arith.constant dense<0.000000e+00> : vector<8x512xf32>
    %11 = tpu.matmul %9, %10, %cst_9 {dimension_numbers = #tpu.dot_dimension_numbers<[1], [0], [0], [1], [0, 0, 1, 1], [], []>} : vector<8x128xbf16>, vector<128x512xbf16>, vector<8x512xf32> -> vector<8x512xf32>
    %12 = arith.addf %8, %11 : vector<8x512xf32>
    %c0_10 = arith.constant 0 : index
    %c0_11 = arith.constant 0 : index
    %13 = vector.load %arg6[%c0_10, %c0_11] : memref<1x512xf32, #tpu.memory_space<vmem>>, vector<1x512xf32>
    %14 = vector.broadcast %13 : vector<1x512xf32> to vector<8x512xf32>
    %15 = arith.addf %12, %14 : vector<8x512xf32>
    %16 = vector.extract_strided_slice %15 {offsets = [0, 0], sizes = [8, 128], strides = [1, 1]} : vector<8x512xf32> to vector<8x128xf32>
    %17 = arith.negf %16 : vector<8x128xf32>
    %18 = math.exp %17 : vector<8x128xf32>
    %cst_12 = arith.constant 1.000000e+00 : f32
    %19 = vector.broadcast %cst_12 : f32 to vector<8x128xf32>
    %20 = arith.addf %19, %18 : vector<8x128xf32>
    %21 = arith.divf %19, %20 : vector<8x128xf32>
    %22 = vector.extract_strided_slice %15 {offsets = [0, 128], sizes = [8, 128], strides = [1, 1]} : vector<8x512xf32> to vector<8x128xf32>
    %23 = arith.negf %22 : vector<8x128xf32>
    %24 = math.exp %23 : vector<8x128xf32>
    %cst_13 = arith.constant 1.000000e+00 : f32
    %25 = vector.broadcast %cst_13 : f32 to vector<8x128xf32>
    %26 = arith.addf %25, %24 : vector<8x128xf32>
    %27 = arith.divf %25, %26 : vector<8x128xf32>
    %28 = vector.extract_strided_slice %15 {offsets = [0, 256], sizes = [8, 128], strides = [1, 1]} : vector<8x512xf32> to vector<8x128xf32>
    %29 = math.tanh %28 : vector<8x128xf32>
    %30 = vector.extract_strided_slice %15 {offsets = [0, 384], sizes = [8, 128], strides = [1, 1]} : vector<8x512xf32> to vector<8x128xf32>
    %31 = arith.negf %30 : vector<8x128xf32>
    %32 = math.exp %31 : vector<8x128xf32>
    %cst_14 = arith.constant 1.000000e+00 : f32
    %33 = vector.broadcast %cst_14 : f32 to vector<8x128xf32>
    %34 = arith.addf %33, %32 : vector<8x128xf32>
    %35 = arith.divf %33, %34 : vector<8x128xf32>
    %c0_15 = arith.constant 0 : index
    %c0_16 = arith.constant 0 : index
    %36 = vector.load %arg10[%c0_15, %c0_16] : memref<8x128xf32, #tpu.memory_space<vmem>>, vector<8x128xf32>
    %37 = arith.mulf %27, %36 : vector<8x128xf32>
    %38 = arith.mulf %21, %29 : vector<8x128xf32>
    %39 = arith.addf %37, %38 : vector<8x128xf32>
    %40 = math.tanh %39 : vector<8x128xf32>
    %41 = arith.mulf %35, %40 : vector<8x128xf32>
    %c0_17 = arith.constant 0 : index
    %c0_18 = arith.constant 0 : index
    %42 = vector.load %arg9[%c0_17, %c0_18] : memref<8x128xf32, #tpu.memory_space<vmem>>, vector<8x128xf32>
    tpu.vector_store %arg9[%c0_17, %c0_18], %41 {strides = array<i32>} : memref<8x128xf32, #tpu.memory_space<vmem>>, vector<8x128xf32>,
    %c0_19 = arith.constant 0 : index
    %c0_20 = arith.constant 0 : index
    %43 = vector.load %arg10[%c0_19, %c0_20] : memref<8x128xf32, #tpu.memory_space<vmem>>, vector<8x128xf32>
    tpu.vector_store %arg10[%c0_19, %c0_20], %39 {strides = array<i32>} : memref<8x128xf32, #tpu.memory_space<vmem>>, vector<8x128xf32>,
    %44 = arith.truncf %41 : vector<8x128xf32> to vector<8x128xbf16>
    %c0_21 = arith.constant 0 : index
    %c0_22 = arith.constant 0 : index
    %45 = vector.load %arg7[%c0_21, %c0_22] : memref<128x384xbf16, #tpu.memory_space<vmem>>, vector<128x384xbf16>
    %cst_23 = arith.constant dense<0.000000e+00> : vector<8x384xf32>
    %46 = tpu.matmul %44, %45, %cst_23 {dimension_numbers = #tpu.dot_dimension_numbers<[1], [0], [0], [1], [0, 0, 1, 1], [], []>} : vector<8x128xbf16>, vector<128x384xbf16>, vector<8x384xf32> -> vector<8x384xf32>
    %c0_24 = arith.constant 0 : index
    %c0_25 = arith.constant 0 : index
    %47 = vector.load %arg8[%c0_24, %c0_25] : memref<1x384xf32, #tpu.memory_space<vmem>>, vector<1x384xf32>
    %48 = vector.broadcast %47 : vector<1x384xf32> to vector<8x384xf32>
    %49 = arith.addf %46, %48 : vector<8x384xf32>
    %50 = vector.extract_strided_slice %49 {offsets = [0, 0], sizes = [8, 128], strides = [1, 1]} : vector<8x384xf32> to vector<8x128xf32>
    %cst_26 = arith.constant dense<0xFF800000> : vector<8xf32>
    %51 = vector.multi_reduction <maximumf>, %50, %cst_26 [1] : vector<8x128xf32> to vector<8xf32>
    %52 = vector.shape_cast %51 : vector<8xf32> to vector<8x1xf32>
    %53 = vector.broadcast %52 : vector<8x1xf32> to vector<8x128xf32>
    %54 = arith.subf %50, %53 : vector<8x128xf32>
    %55 = math.exp %54 : vector<8x128xf32>
    %cst_27 = arith.constant dense<0.000000e+00> : vector<8xf32>
    %56 = vector.multi_reduction <add>, %55, %cst_27 [1] : vector<8x128xf32> to vector<8xf32>
    %57 = vector.shape_cast %56 : vector<8xf32> to vector<8x1xf32>
    %58 = math.log %57 : vector<8x1xf32>
    %59 = vector.broadcast %58 : vector<8x1xf32> to vector<8x128xf32>
    %60 = arith.subf %54, %59 : vector<8x128xf32>
    %c0_28 = arith.constant 0 : index
    %c0_29 = arith.constant 0 : index
    %c0_30 = arith.constant 0 : index
    %61 = vector.load %arg11[%c0_28, %c0_29, %c0_30] : memref<1x8x384xf32, #tpu.memory_space<vmem>>, vector<1x8x128xf32>
    %62 = vector.shape_cast %61 : vector<1x8x128xf32> to vector<8x128xf32>
    %63 = vector.shape_cast %60 : vector<8x128xf32> to vector<1x8x128xf32>
    tpu.vector_store %arg11[%c0_28, %c0_29, %c0_30], %63 {strides = array<i32>} : memref<1x8x384xf32, #tpu.memory_space<vmem>>, vector<1x8x128xf32>,
    %64 = vector.extract_strided_slice %49 {offsets = [0, 128], sizes = [8, 128], strides = [1, 1]} : vector<8x384xf32> to vector<8x128xf32>
    %cst_31 = arith.constant dense<0xFF800000> : vector<8xf32>
    %65 = vector.multi_reduction <maximumf>, %64, %cst_31 [1] : vector<8x128xf32> to vector<8xf32>
    %66 = vector.shape_cast %65 : vector<8xf32> to vector<8x1xf32>
    %67 = vector.broadcast %66 : vector<8x1xf32> to vector<8x128xf32>
    %68 = arith.subf %64, %67 : vector<8x128xf32>
    %69 = math.exp %68 : vector<8x128xf32>
    %cst_32 = arith.constant dense<0.000000e+00> : vector<8xf32>
    %70 = vector.multi_reduction <add>, %69, %cst_32 [1] : vector<8x128xf32> to vector<8xf32>
    %71 = vector.shape_cast %70 : vector<8xf32> to vector<8x1xf32>
    %72 = math.log %71 : vector<8x1xf32>
    %73 = vector.broadcast %72 : vector<8x1xf32> to vector<8x128xf32>
    %74 = arith.subf %68, %73 : vector<8x128xf32>
    %c0_33 = arith.constant 0 : index
    %c0_34 = arith.constant 0 : index
    %c128 = arith.constant 128 : index
    %75 = vector.load %arg11[%c0_33, %c0_34, %c128] : memref<1x8x384xf32, #tpu.memory_space<vmem>>, vector<1x8x128xf32>
    %76 = vector.shape_cast %75 : vector<1x8x128xf32> to vector<8x128xf32>
    %77 = vector.shape_cast %74 : vector<8x128xf32> to vector<1x8x128xf32>
    tpu.vector_store %arg11[%c0_33, %c0_34, %c128], %77 {strides = array<i32>} : memref<1x8x384xf32, #tpu.memory_space<vmem>>, vector<1x8x128xf32>,
    %78 = vector.extract_strided_slice %49 {offsets = [0, 256], sizes = [8, 128], strides = [1, 1]} : vector<8x384xf32> to vector<8x128xf32>
    %c0_35 = arith.constant 0 : index
    %c0_36 = arith.constant 0 : index
    %c256 = arith.constant 256 : index
    %79 = vector.load %arg11[%c0_35, %c0_36, %c256] : memref<1x8x384xf32, #tpu.memory_space<vmem>>, vector<1x8x128xf32>
    %80 = vector.shape_cast %79 : vector<1x8x128xf32> to vector<8x128xf32>
    %81 = vector.shape_cast %78 : vector<8x128xf32> to vector<1x8x128xf32>
    tpu.vector_store %arg11[%c0_35, %c0_36, %c256], %81 {strides = array<i32>} : memref<1x8x384xf32, #tpu.memory_space<vmem>>, vector<1x8x128xf32>,
    return
  }
  func.func @transform_0(%arg0: i32) -> (i32, i32, i32) {
    %c0_i32 = arith.constant 0 : i32
    %c0_i32_0 = arith.constant 0 : i32
    %c0_i32_1 = arith.constant 0 : i32
    return %arg0, %c0_i32, %c0_i32_0 : i32, i32, i32
  }
  func.func @transform_1(%arg0: i32) -> (i32, i32) {
    %c0_i32 = arith.constant 0 : i32
    %c0_i32_0 = arith.constant 0 : i32
    %c0_i32_1 = arith.constant 0 : i32
    return %c0_i32, %c0_i32_0 : i32, i32
  }
  func.func @transform_2(%arg0: i32) -> (i32, i32) {
    %c0_i32 = arith.constant 0 : i32
    %c0_i32_0 = arith.constant 0 : i32
    %c0_i32_1 = arith.constant 0 : i32
    return %c0_i32, %c0_i32_0 : i32, i32
  }
  func.func @transform_3(%arg0: i32) -> (i32, i32) {
    %c0_i32 = arith.constant 0 : i32
    %c0_i32_0 = arith.constant 0 : i32
    %c0_i32_1 = arith.constant 0 : i32
    return %c0_i32, %c0_i32_0 : i32, i32
  }
  func.func @transform_4(%arg0: i32) -> (i32, i32) {
    %c0_i32 = arith.constant 0 : i32
    %c0_i32_0 = arith.constant 0 : i32
    %c0_i32_1 = arith.constant 0 : i32
    return %c0_i32, %c0_i32_0 : i32, i32
  }
  func.func @transform_5(%arg0: i32) -> (i32, i32) {
    %c0_i32 = arith.constant 0 : i32
    %c0_i32_0 = arith.constant 0 : i32
    %c0_i32_1 = arith.constant 0 : i32
    return %c0_i32, %c0_i32_0 : i32, i32
  }
  func.func @transform_6(%arg0: i32) -> (i32, i32) {
    %c0_i32 = arith.constant 0 : i32
    %c0_i32_0 = arith.constant 0 : i32
    %c0_i32_1 = arith.constant 0 : i32
    return %c0_i32, %c0_i32_0 : i32, i32
  }
  func.func @transform_7(%arg0: i32) -> (i32, i32) {
    %c0_i32 = arith.constant 0 : i32
    %c0_i32_0 = arith.constant 0 : i32
    %c0_i32_1 = arith.constant 0 : i32
    return %c0_i32, %c0_i32_0 : i32, i32
  }
  func.func @transform_8(%arg0: i32) -> (i32, i32) {
    %c0_i32 = arith.constant 0 : i32
    %c0_i32_0 = arith.constant 0 : i32
    %c0_i32_1 = arith.constant 0 : i32
    return %c0_i32, %c0_i32_0 : i32, i32
  }
  func.func @transform_9(%arg0: i32) -> (i32, i32) {
    %c0_i32 = arith.constant 0 : i32
    %c0_i32_0 = arith.constant 0 : i32
    %c0_i32_1 = arith.constant 0 : i32
    return %c0_i32, %c0_i32_0 : i32, i32
  }
  func.func @transform_10(%arg0: i32) -> (i32, i32, i32) {
    %c0_i32 = arith.constant 0 : i32
    %c0_i32_0 = arith.constant 0 : i32
    %c0_i32_1 = arith.constant 0 : i32
    return %arg0, %c0_i32, %c0_i32_0 : i32, i32, i32
  }
}

</mosaic_0001>

<bundles_post_ra>
// kernel: _lambda_.1
= control target key start
LH: loop header
LB: loop body
LE: loop exit
PB: predicated region body
PF: predicated region fallthrough
CT: control target
= control target key end

     0   :  { %16 = vsyncpa [#allocation3], 0  ;;  %s1194_s0 = inlined_call_operand.vmem [shape: f32[1,8,16], index: 0, kind: input, shape index: {}]   ;;  %s1195_s1 = inlined_call_operand.vmem [shape: f32[8,128], index: 1, kind: input, shape index: {}]   ;;  %s1196_s2 = inlined_call_operand.vmem [shape: f32[8,128], index: 2, kind: input, shape index: {}]   ;;  %s1197_s3 = inlined_call_operand.vmem [shape: bf16[16,512], index: 3, kind: input, shape index: {}]   ;;  %s1198_s4 = inlined_call_operand.hbm [shape: bf16[128,512], index: 4, kind: input, shape index: {}]   ;;  %s1199_s5 = inlined_call_operand.vmem [shape: f32[1,512], index: 5, kind: input, shape index: {}]   ;;  %s1200_s6 = inlined_call_operand.hbm [shape: bf16[128,384], index: 6, kind: input, shape index: {}]   ;;  %s1201_s7 = inlined_call_operand.vmem [shape: f32[1,384], index: 7, kind: input, shape index: {}]   ;;  %s1202_s8 = inlined_call_operand.vmem [shape: f32[8,128], index: 8, kind: output, shape index: {0}]   ;;  %s1203_s9 = inlined_call_operand.vmem [shape: f32[8,128], index: 9, kind: output, shape index: {1}]   ;;  %s1204_s10 = inlined_call_operand.vmem [shape: f32[1,8,384], index: 10, kind: output, shape index: {2}]  }
   0x1   :  { %17 = vsyncpa [#allocation5], 0  ;;  %s1063_s13 = smov [#allocation2]  }
   0x2   :  { %s31_s14 = sshll.u32 %s1063_s13, 4  ;;  %s32_s14 = int_to_ptr.vmem [resolvable:$true] %s31_s14 }
   0x3   :  { %s1027_s15 = scalar_lea.vmem %s32_s14, 4096  ;;  %p1032_p1 = scmp.lt.s32.totalorder %s32_s14, %s32_s14 }
   0x4   :  { %p1028_p0 = scmp.ne.s32.totalorder %s32_s14, %s1027_s15  ;;  %p1033_p2 = scmp.lt.s32.totalorder %s1027_s15, %s1027_s15 }
   0x6   :  { %p1034_p3 = por %p1033_p2, %p1032_p1 }
   0x8   :  { %p1035_p4 = pnand %p1034_p3, %p1028_p0 }
   0xa   :  { %1038 = shalt.err (!%p1035_p4)
}
   0xb   :  { %s1064_s16 = smov 256   ;;  %s1065_s17 = smov 16  }
   0xc   :  { %37 = dma.hbm_to_vmem [thread:$0]  %s1198_s4, 4096, %s32_s14, [#allocation3], %s1064_s16, %s1064_s16, %s1065_s17  }
   0xd   :  { %s1066_s20 = smov [#allocation4]  }
   0xe   :  { %s45_s21 = sshll.u32 %s1066_s20, 4  ;;  %s46_s21 = int_to_ptr.vmem [resolvable:$true] %s45_s21 }
   0xf   :  { %s1047_s22 = scalar_lea.vmem %s46_s21, 3072  ;;  %p1052_p6 = scmp.lt.s32.totalorder %s46_s21, %s46_s21 }
  0x10   :  { %p1048_p5 = scmp.ne.s32.totalorder %s46_s21, %s1047_s22  ;;  %p1053_p7 = scmp.lt.s32.totalorder %s1047_s22, %s1047_s22 }
  0x12   :  { %p1054_p8 = por %p1053_p7, %p1052_p6 }
  0x14   :  { %p1055_p9 = pnand %p1054_p8, %p1048_p5 }
  0x16   :  { %1058 = shalt.err (!%p1055_p9)
}
  0x17   :  { %s1067_s23 = smov 192   ;;  %s1068_s24 = smov 12  }
  0x18   :  { %51 = dma.hbm_to_vmem [thread:$0]  %s1200_s6, 3072, %s46_s21, [#allocation5], %s1067_s23, %s1067_s23, %s1068_s24  }
  0x19   :  { %1059 = dma.done.wait [#allocation3], 4096  }
  0x1a   :  { %1060 = vsyncadd [#allocation3], 4294963200 }
  0x1b   :  { %1061 = dma.done.wait [#allocation5], 3072  }
  0x1c   :  { %1062 = vsyncadd [#allocation5], 4294964224  ;;  %v1069_v0 = vmov 0   ;;  %v909_v1 = vld [vmem:[#allocation2 + $0xe4] ss:$16 sps:$4 sm:$0xff]   ;;  %vm371_vm0 = vcmask 130048  }
  0x1d   :  { %301 = vmatprep.mubr.bf16.mxu0 %v1069_v0  ;;  %342 = vmatprep.mubr.bf16.mxu1 %v1069_v0  ;;  %v911_v2 = vld [vmem:[#allocation2 + $0xe0] ss:$16 sps:$4 sm:$0xff]   ;;  %v912_v3 = vld [vmem:[#allocation2 + $0xc4] ss:$16 sps:$4 sm:$0xff]   ;;  %v918_v6 = vld [vmem:[#allocation2 + $0xec] ss:$16 sps:$4 sm:$0xff]  }
  0x1e   :  { %269 = vmatprep.subr.bf16.mxu0 %v909_v1  ;;  %v914_v4 = vld [vmem:[#allocation2 + $0xc0] ss:$16 sps:$4 sm:$0xff]   ;;  %v915_v5 = vld [vmem:[#allocation2 + $0xa4] ss:$16 sps:$4 sm:$0xff]   ;;  %v920_v7 = vld [vmem:[#allocation2 + $0xe8] ss:$16 sps:$4 sm:$0xff]   ;;  %310 = vmatprep.subr.bf16.mxu1 %v918_v6 }
  0x1f   :  { %270 = vmatpush1.bf16.msra.mxu0 %v911_v2  ;;  %v917_v8 = vld [vmem:[#allocation2 + $0xa0] ss:$16 sps:$4 sm:$0xff]   ;;  %311 = vmatpush1.bf16.msra.mxu1 %v920_v7  ;;  %v924_v9 = vld [vmem:[#allocation2 + $0xcc] ss:$16 sps:$4 sm:$0xff]   ;;  %v926_v10 = vld [vmem:[#allocation2 + $0xc8] ss:$16 sps:$4 sm:$0xff]   ;;  %v459_v2 = vlaneseq }
  0x20   :  { %271 = vmatprep.subr.bf16.mxu0 %v912_v3  ;;  %v921_v11 = vld [vmem:[#allocation2 + $0x84] ss:$16 sps:$4 sm:$0xff]   ;;  %312 = vmatprep.subr.bf16.mxu1 %v924_v9  ;;  %v923_v12 = vld [vmem:[#allocation2 + $0x80] ss:$16 sps:$4 sm:$0xff]   ;;  %v930_v13 = vld [vmem:[#allocation2 + $0xac] ss:$16 sps:$4 sm:$0xff]  }
  0x21   :  { %v927_v14 = vld [vmem:[#allocation2 + $0x64] ss:$16 sps:$4 sm:$0xff]   ;;  %v932_v15 = vld [vmem:[#allocation2 + $0xa8] ss:$16 sps:$4 sm:$0xff]   ;;  %v936_v16 = vld [vmem:[#allocation2 + $0x8c] ss:$16 sps:$4 sm:$0xff]  }
  0x22   :  { %v929_v17 = vld [vmem:[#allocation2 + $0x60] ss:$16 sps:$4 sm:$0xff]   ;;  %v933_v18 = vld [vmem:[#allocation2 + $0x44] ss:$16 sps:$4 sm:$0xff]   ;;  %v938_v19 = vld [vmem:[#allocation2 + $0x88] ss:$16 sps:$4 sm:$0xff]  }
  0x23   :  { %272 = vmatpush1.bf16.msra.mxu0 %v914_v4  ;;  %313 = vmatpush1.bf16.msra.mxu1 %v926_v10  ;;  %v942_v20 = vld [vmem:[#allocation2 + $0x6c] ss:$16 sps:$4 sm:$0xff]   ;;  %v935_v21 = vld [vmem:[#allocation2 + $0x40] ss:$16 sps:$4 sm:$0xff]   ;;  %v939_v22 = vld [vmem:[#allocation2 + $0x24] ss:$16 sps:$4 sm:$0xff]  }
  0x24   :  { %273 = vmatprep.subr.bf16.mxu0 %v915_v5  ;;  %314 = vmatprep.subr.bf16.mxu1 %v930_v13  ;;  %v944_v23 = vld [vmem:[#allocation2 + $0x68] ss:$16 sps:$4 sm:$0xff]   ;;  %v948_v24 = vld [vmem:[#allocation2 + $0x4c] ss:$16 sps:$4 sm:$0xff]   ;;  %v941_v25 = vld [vmem:[#allocation2 + $0x20] ss:$16 sps:$4 sm:$0xff]  }
  0x25   :  { %v950_v26 = vld [vmem:[#allocation2 + $0x48] ss:$16 sps:$4 sm:$0xff]   ;;  %v945_v27 = vld [vmem:[#allocation2 + $0x4] ss:$16 sps:$4 sm:$0xff]   ;;  %v954_v28 = vld [vmem:[#allocation2 + $0x2c] ss:$16 sps:$4 sm:$0xff]  }
  0x26   :  { %v947_v29 = vld [vmem:[#allocation2] ss:$16 sps:$4 sm:$0xff]   ;;  %v956_v31 = vld [vmem:[#allocation2 + $0x28] ss:$16 sps:$4 sm:$0xff]   ;;  %v953_v32 = vld [vmem:[%s1197_s3 + $0x4] ss:$16 sps:$4 sm:$0xff]  }
  0x27   :  { %274 = vmatpush1.bf16.msra.mxu0 %v917_v8  ;;  %315 = vmatpush1.bf16.msra.mxu1 %v932_v15  ;;  %v65_v30 = vld [vmem:[%s1195_s1] sm:$0xff]  ;;  %v957_v33 = vld [vmem:[#allocation2 + $0xc] ss:$16 sps:$4 sm:$0xff]   ;;  %v959_v35 = vld [vmem:[#allocation2 + $0x8] ss:$16 sps:$4 sm:$0xff]   ;;  %v1070_v44 = vmov 0.0  }
  0x28   :  { %275 = vmatprep.subr.bf16.mxu0 %v921_v11  ;;  %316 = vmatprep.subr.bf16.mxu1 %v936_v16  ;;  %v951_v34 = vld [vmem:[%s1197_s3] ss:$16 sps:$4 sm:$0xff]   ;;  %v76_v36 = vpack.c.bf16 %v65_v30, %v65_v30  ;;  %v962_v37 = vld [vmem:[%s1197_s3 + $0xc] ss:$16 sps:$4 sm:$0xff]   ;;  %v960_v39 = vld [vmem:[%s1197_s3 + $0x8] ss:$16 sps:$4 sm:$0xff]  }
  0x29   :  { %v69_v38 = vld [vmem:[%s1194_s0] sm:$0xff]  ;;  %v965_v41 = vld [vmem:[#allocation4 + $0xac] ss:$12 sps:$4 sm:$0xff]   ;;  %v963_v42 = vld [vmem:[#allocation4 + $0xa8] ss:$12 sps:$4 sm:$0xff]   ;;  %vm1071_vm1 = vmmov 0  }
  0x2a   :  { %v70_v40 = vpack.c.bf16 %v69_v38, %v69_v38  ;;  %v966_v43 = vld [vmem:[#allocation4 + $0xb0] ss:$12 sps:$4 sm:$0xff]   ;;  %v969_v45 = vld [vmem:[#allocation4 + $0x94] ss:$12 sps:$4 sm:$0xff]   ;;  %v970_v47 = vld [vmem:[#allocation4 + $0x98] ss:$12 sps:$4 sm:$0xff]  }
  0x2b   :  { %276 = vmatpush1.bf16.msra.mxu0 %v923_v12  ;;  %317 = vmatpush1.bf16.msra.mxu1 %v938_v19  ;;  %v967_v46 = vld [vmem:[#allocation4 + $0x90] ss:$12 sps:$4 sm:$0xff]   ;;  %v971_v49 = vld [vmem:[#allocation4 + $0x78] ss:$12 sps:$4 sm:$0xff]   ;;  %v974_v50 = vld [vmem:[#allocation4 + $0x80] ss:$12 sps:$4 sm:$0xff]  }
  0x2c   :  { %277 = vmatprep.subr.bf16.mxu0 %v927_v14  ;;  %318 = vmatprep.subr.bf16.mxu1 %v942_v20  ;;  %v973_v48 = vld [vmem:[#allocation4 + $0x7c] ss:$12 sps:$4 sm:$0xff]   ;;  %v977_v51 = vld [vmem:[#allocation4 + $0x64] ss:$12 sps:$4 sm:$0xff]   ;;  %v975_v52 = vld [vmem:[#allocation4 + $0x60] ss:$12 sps:$4 sm:$0xff]  }
  0x2d   :  { %v978_v53 = vld [vmem:[#allocation4 + $0x68] ss:$12 sps:$4 sm:$0xff]   ;;  %v981_v55 = vld [vmem:[#allocation4 + $0x4c] ss:$12 sps:$4 sm:$0xff]   ;;  %v982_v56 = vld [vmem:[#allocation4 + $0x50] ss:$12 sps:$4 sm:$0xff]  }
  0x2e   :  { %v979_v54 = vld [vmem:[#allocation4 + $0x48] ss:$12 sps:$4 sm:$0xff]   ;;  %v983_v58 = vld [vmem:[#allocation4 + $0x30] ss:$12 sps:$4 sm:$0xff]   ;;  %v986_v59 = vld [vmem:[#allocation4 + $0x38] ss:$12 sps:$4 sm:$0xff]  }
  0x2f   :  { %278 = vmatpush1.bf16.msra.mxu0 %v929_v17  ;;  %319 = vmatpush1.bf16.msra.mxu1 %v944_v23  ;;  %v985_v57 = vld [vmem:[#allocation4 + $0x34] ss:$12 sps:$4 sm:$0xff]   ;;  %v989_v60 = vld [vmem:[#allocation4 + $0x1c] ss:$12 sps:$4 sm:$0xff]   ;;  %v987_v61 = vld [vmem:[#allocation4 + $0x18] ss:$12 sps:$4 sm:$0xff]  }
  0x30   :  { %279 = vmatprep.subr.bf16.mxu0 %v933_v18  ;;  %320 = vmatprep.subr.bf16.mxu1 %v948_v24  ;;  %v990_v62 = vld [vmem:[#allocation4 + $0x20] ss:$12 sps:$4 sm:$0xff]   ;;  %v993_v63 = vld [vmem:[#allocation4 + $0x4] ss:$12 sps:$4 sm:$0xff]   ;;  %v994_v1 = vld [vmem:[#allocation4 + $0x8] ss:$12 sps:$4 sm:$0xff]  }
  0x31   :  { %v1156_v3 = vshrl.u32 %v459_v2, 7  ;;  %v457_v8 = vld [vmem:[%s1199_s5] sm:$0xf] }
  0x33   :  { %280 = vmatpush1.bf16.msra.mxu0 %v935_v21  ;;  %321 = vmatpush1.bf16.msra.mxu1 %v950_v26  ;;  %v461_v6 = vsub.s32 0, %v1156_v3  ;;  %v465_v10 = vsub.s32 1, %v1156_v3 }
  0x34   :  { %281 = vmatprep.subr.bf16.mxu0 %v939_v22  ;;  %322 = vmatprep.subr.bf16.mxu1 %v954_v28  ;;  %v473_v28 = vsub.s32 3, %v1156_v3 }
  0x35   :  { %v462_v13 = vrot.slane %v457_v8, %v461_v6  ;;  %v466_v17 = vrot.slane %v457_v8, %v465_v10 }
  0x37   :  { %282 = vmatpush1.bf16.msra.mxu0 %v941_v25  ;;  %323 = vmatpush1.bf16.msra.mxu1 %v956_v31 }
  0x38   :  { %283 = vmatprep.subr.bf16.mxu0 %v945_v27  ;;  %324 = vmatprep.subr.bf16.mxu1 %v957_v33 }
  0x3b   :  { %284 = vmatpush1.bf16.msra.mxu0 %v947_v29  ;;  %325 = vmatpush1.bf16.msra.mxu1 %v959_v35 }
  0x3c   :  { %389 = vmatprep.subr.bf16.mxu0 %v953_v32  ;;  %430 = vmatprep.subr.bf16.mxu1 %v962_v37  ;;  %v474_v32 = vrot.slane %v457_v8, %v473_v28 }
  0x3e   :  { %302 = vmatmul.mubr.bf16.vlgmr.msra.gmra.mxu0 %v76_v36  ;;  %343 = vmatmul.mubr.bf16.vlgmr.msra.gmra.mxu1 %v76_v36 }
  0x3f   :  { %390 = vmatpush1.bf16.msra.mxu0 %v951_v34  ;;  %407 = vmatprep.mubr.bf16.mxu0 %v1069_v0  ;;  %v469_v34 = vsub.s32 2, %v1156_v3 }
  0x40   :  { %431 = vmatpush1.bf16.msra.mxu1 %v960_v39  ;;  %448 = vmatprep.mubr.bf16.mxu1 %v1069_v0 }
  0x41   :  { %688 = vmatprep.subr.bf16.mxu0 %v965_v41  ;;  %880 = vmatprep.subr.bf16.mxu1 %v1070_v44  ;;  %v470_v37 = vrot.slane %v457_v8, %v469_v34 }
  0x46   :  { %842 = vmatmul.mubr.msk.bf16.vlgmr.msra.gmra.mxu0 %vm371_vm0, %v70_v40  ;;  %843 = vmatmul.mubr.msk.bf16.vlgmr.msra.gmra.mxu1 %vm371_vm0, %v70_v40 }
  0x47   :  { %720 = vmatprep.mubr.bf16.mxu0 %v1069_v0  ;;  %689 = vmatpush1.bf16.msra.mxu0 %v963_v42  ;;  %v991_v0 = vld [vmem:[#allocation4] ss:$12 sps:$4 sm:$0xff]  }
  0x48   :  { %881 = vmatpush3.bf16.msra.mxu1 %v966_v43  ;;  %690 = vmatprep.subr.bf16.mxu0 %v969_v45 }
  0x49   :  { %882 = vmatprep.subr.bf16.mxu1 %v1070_v44  ;;  %896 = vmatprep.mubr.msk.bf16.mxu1 %vm1071_vm1, %v1070_v44 }
  0x4b   :  { %691 = vmatpush1.bf16.msra.mxu0 %v967_v46  ;;  %v67_v46 = vld [vmem:[%s1196_s2] sm:$0xff] }
  0x4c   :  { %883 = vmatpush3.bf16.msra.mxu1 %v970_v47  ;;  %692 = vmatprep.subr.bf16.mxu0 %v973_v48 }
  0x4d   :  { %884 = vmatprep.subr.bf16.mxu1 %v1070_v44 }
  0x4f   :  { %693 = vmatpush1.bf16.msra.mxu0 %v971_v49 }
  0x50   :  { %885 = vmatpush3.bf16.msra.mxu1 %v974_v50  ;;  %694 = vmatprep.subr.bf16.mxu0 %v977_v51 }
  0x51   :  { %886 = vmatprep.subr.bf16.mxu1 %v1070_v44 }
  0x53   :  { %695 = vmatpush1.bf16.msra.mxu0 %v975_v52 }
  0x54   :  { %887 = vmatpush3.bf16.msra.mxu1 %v978_v53  ;;  %696 = vmatprep.subr.bf16.mxu0 %v981_v55 }
  0x55   :  { %888 = vmatprep.subr.bf16.mxu1 %v1070_v44 }
  0x57   :  { %697 = vmatpush1.bf16.msra.mxu0 %v979_v54 }
  0x58   :  { %889 = vmatpush3.bf16.msra.mxu1 %v982_v56  ;;  %698 = vmatprep.subr.bf16.mxu0 %v985_v57  ;;  %v543_v57 = vld [vmem:[%s1201_s7] sm:$0x7] }
  0x59   :  { %890 = vmatprep.subr.bf16.mxu1 %v1070_v44 }
  0x5b   :  { %699 = vmatpush1.bf16.msra.mxu0 %v983_v58  ;;  %v548_v58 = vrot.slane %v543_v57, %v461_v6 }
  0x5c   :  { %891 = vmatpush3.bf16.msra.mxu1 %v986_v59  ;;  %700 = vmatprep.subr.bf16.mxu0 %v989_v60  ;;  %v556_v59 = vrot.slane %v543_v57, %v469_v34 }
  0x5d   :  { %892 = vmatprep.subr.bf16.mxu1 %v1070_v44 }
  0x5f   :  { %701 = vmatpush1.bf16.msra.mxu0 %v987_v61 }
  0x60   :  { %893 = vmatpush3.bf16.msra.mxu1 %v990_v62  ;;  %702 = vmatprep.subr.bf16.mxu0 %v993_v63 }
  0x61   :  { %894 = vmatprep.subr.bf16.mxu1 %v1070_v44 }
  0x63   :  { %703 = vmatpush1.bf16.msra.mxu0 %v991_v0  ;;  %v552_v0 = vrot.slane %v543_v57, %v465_v10 }
  0x64   :  { %895 = vmatpush3.bf16.msra.mxu1 %v994_v1 }
  0xfe   :  { %v303_v4 = vpop.f32.mrf.mxu0  ;;  %v344_v9 = vpop.f32.mrf.mxu1 }
 0x100   :  { %v305_v5 = vpop.f32.mrf.mxu0  ;;  %v346_v12 = vpop.f32.mrf.mxu1 }
 0x102   :  { %v307_v7 = vpop.f32.mrf.mxu0  ;;  %v348_v15 = vpop.f32.mrf.mxu1 }
 0x104   :  { %v308_v11 = vpop.f32.mrf.mxu0  ;;  %v349_v19 = vpop.f32.mrf.mxu1 }
 0x106   :  { %v409_v14 = vpop.f32.mrf.mxu0  ;;  %v450_v23 = vpop.f32.mrf.mxu1 }
 0x107   :  { %v410_v16 = vadd.f32 %v409_v14, %v303_v4  ;;  %v451_v36 = vadd.f32 %v450_v23, %v344_v9 }
 0x108   :  { %v411_v18 = vpop.f32.mrf.mxu0  ;;  %v452_v27 = vpop.f32.mrf.mxu1 }
 0x109   :  { %v479_v20 = vadd.f32 %v462_v13, %v410_v16  ;;  %v412_v21 = vadd.f32 %v411_v18, %v305_v5  ;;  %v453_v31 = vadd.f32 %v452_v27, %v346_v12  ;;  %v481_v40 = vadd.f32 %v470_v37, %v451_v36 }
 0x10a   :  { %v413_v22 = vpop.f32.mrf.mxu0  ;;  %v454_v30 = vpop.f32.mrf.mxu1 }
 0x10b   :  { %v844_v24 = vmul.f32 -1.442695, %v479_v20  ;;  %v480_v25 = vadd.f32 %v466_v17, %v412_v21  ;;  %v482_v35 = vadd.f32 %v474_v32, %v453_v31 }
 0x10c   :  { %v414_v26 = vpop.f32.mrf.mxu0  ;;  %v455_v33 = vpop.f32.mrf.mxu1 }
 0x10d   :  { %995 = vpow2.f32 %v844_v24  ;;  %v845_v29 = vmul.f32 -1.442695, %v480_v25  ;;  %v846_v38 = vmul.f32 -1.442695, %v482_v35 }
 0x10f   :  { %997 = vpow2.f32 %v845_v29 }
 0x110   :  { %999 = vpow2.f32 %v846_v38 }
 0x11a   :  { %v996_v39 = vpop.eup %995 }
 0x11b   :  { %v486_v41 = vadd.f32 1.0, %v996_v39 }
 0x11c   :  { %v998_v42 = vpop.eup %997 }
 0x11d   :  { %1001 = vrcp.f32 %v486_v41  ;;  %v492_v43 = vadd.f32 1.0, %v998_v42  ;;  %v1000_v44 = vpop.eup %999 }
 0x11e   :  { %1003 = vtanh.f32 %v481_v40  ;;  %v499_v49 = vadd.f32 1.0, %v1000_v44 }
 0x11f   :  { %1005 = vrcp.f32 %v492_v43 }
 0x120   :  { %1007 = vrcp.f32 %v499_v49 }
 0x12a   :  { %v1002_v45 = vpop.eup %1001 }
 0x12b   :  { %v1004_v47 = vpop.eup %1003 }
 0x12c   :  { %v1006_v48 = vpop.eup %1005  ;;  %v504_v51 = vmul.f32 %v1004_v47, %v1002_v45 }
 0x12d   :  { %v503_v50 = vmul.f32 %v1006_v48, %v67_v46  ;;  %v1008_v53 = vpop.eup %1007 }
 0x12f   :  { %v505_v52 = vadd.f32 %v504_v51, %v503_v50 }
 0x131   :  { %1009 = vtanh.f32 %v505_v52  ;;  %509 = vst [vmem:[%s1203_s9] sm:$0xff] %v505_v52 }
 0x13e   :  { %v1010_v54 = vpop.eup %1009 }
 0x13f   :  { %v507_v55 = vmul.f32 %v1010_v54, %v1008_v53 }
 0x141   :  { %508 = vst [vmem:[%s1202_s8] sm:$0xff] %v507_v55  ;;  %v510_v56 = vpack.c.bf16 %v507_v55, %v507_v55 }
 0x143   :  { %721 = vmatmul.mubr.bf16.vlgmr.msra.gmra.mxu0 %v510_v56  ;;  %897 = vmatmul.mubr.bf16.vlgmr.msra.gmra.mxu1 %v510_v56 }
 0x203   :  { %v722_v60 = vpop.f32.mrf.mxu0  ;;  %v763_v61 = vpop.f32.mrf.mxu1 }
 0x204   :  { %v723_v62 = vadd.f32 %v722_v60, %v548_v58  ;;  %v764_v63 = vadd.f32 %v763_v61, %v556_v59 }
 0x205   :  { %v724_v1 = vpop.f32.mrf.mxu0  ;;  %v898_v2 = vpop.f32.mrf.mxu1 }
 0x206   :  { %791 = vst [vmem:[%s1204_s10 + $0x10] sm:$0xff] %v764_v63  ;;  %769 = vmax.xlane.f32.xlu0 %v723_v62  ;;  %v725_v7 = vadd.f32 %v724_v1, %v552_v0 }
 0x207   :  { %v726_v4 = vpop.f32.mrf.mxu0  ;;  %v766_v5 = vpop.f32.mrf.mxu1 }
 0x209   :  { %v727_v8 = vpop.f32.mrf.mxu0  ;;  %v899_v6 = vpop.f32.mrf.mxu1 }
 0x20a   :  { %780 = vmax.xlane.f32.xlu0 %v725_v7 }
 0x28f   :  { %v770_v9 = vpop.xlane.xlu0 %769 }
 0x290   :  { %v771_v11 = vsub.f32 %v723_v62, %v770_v9 }
 0x292   :  { %v772_v12 = vmul.f32 1.442695, %v771_v11 }
 0x293   :  { %v781_v13 = vpop.xlane.xlu0 %780 }
 0x294   :  { %v782_v14 = vsub.f32 %v725_v7, %v781_v13  ;;  %1011 = vpow2.f32 %v772_v12 }
 0x296   :  { %v783_v3 = vmul.f32 1.442695, %v782_v14 }
 0x298   :  { %1013 = vpow2.f32 %v783_v3 }
 0x2a1   :  { %v1012_v10 = vpop.eup %1011 }
 0x2a2   :  { %774 = vadd.xlane.f32.xlu1 %v1012_v10 }
 0x2a5   :  { %v1014_v15 = vpop.eup %1013 }
 0x2a6   :  { %785 = vadd.xlane.f32.xlu1 %v1014_v15 }
 0x32b   :  { %v775_v16 = vpop.xlane.xlu1 %774 }
 0x32c   :  { %1015 = vlog2.f32 %v775_v16 }
 0x32f   :  { %v786_v17 = vpop.xlane.xlu1 %785 }
 0x330   :  { %1017 = vlog2.f32 %v786_v17 }
 0x339   :  { %v1016_v18 = vpop.eup %1015 }
 0x33a   :  { %v777_v19 = vmul.f32 0.6931472, %v1016_v18 }
 0x33c   :  { %v778_v20 = vsub.f32 %v771_v11, %v777_v19 }
 0x33d   :  { %v1018_v21 = vpop.eup %1017 }
 0x33e   :  { %779 = vst [vmem:[%s1204_s10] sm:$0xff] %v778_v20  ;;  %v788_v22 = vmul.f32 0.6931472, %v1018_v21 }
 0x340   :  { %v789_v23 = vsub.f32 %v782_v14, %v788_v22 }
 0x342   :  { %790 = vst [vmem:[%s1204_s10 + $0x8] sm:$0xff] %v789_v23 }
 0x343   :  { %804 = vsyncpa [#allocation3], 1 }
 0x344   :  { %805 = vsyncpa [#allocation5], 1 }

</bundles_post_ra>
